<compile_context>
chip_gen: v7x
topology: tpu7x:2x2x1
jax: 0.10.0
libtpu: 0.0.40
codegen_flags: <defaults>
</compile_context>

<pallas_src>
import functools

import jax
import jax.numpy as jnp
from jax.experimental import pallas as pl
from jax.experimental.pallas import tpu as pltpu


def dqn_kernel(x_ref, w1_ref, b1_ref, w2_ref, b2_ref, out_ref):
    # x arrives as f32; cast to bf16 on the VPU here (hidden under the DMA)
    # so the wrapper never does a separate HBM cast pass over x.
    x = x_ref[...].astype(w1_ref.dtype)
    # fc1: bf16 x bf16 -> f32 accumulate on the MXU.
    h = jnp.dot(x, w1_ref[...], preferred_element_type=jnp.float32)
    # bias + relu in f32 on the VPU.
    h = jnp.maximum(h + b1_ref[...], 0.0)
    # fc2: bf16 operands, f32 accumulate; unpadded (Bt, 32) output tile.
    o = jnp.dot(h.astype(w2_ref.dtype), w2_ref[...],
                preferred_element_type=jnp.float32)
    out_ref[...] = (o + b2_ref[...]).astype(out_ref.dtype)


# Conservative budget for the single-shot (everything resident) path; v7x has
# only 64 MiB VMEM per TensorCore (32 MiB scoped default).
_VMEM_BUDGET_BYTES = 20 * 1024 * 1024


@functools.partial(jax.jit,
                   static_argnames=("action_space_dim", "action_dim",
                                    "block_b", "bf16_out"))
def dqn_forward(x, w1, b1, w2, b2, action_space_dim, action_dim, *,
                block_b=1024, bf16_out=False):
    B, S = x.shape
    H = w1.shape[1]
    O = action_space_dim * action_dim
    assert w2.shape == (H, O), "w2 must be (hidden, action_space_dim*action_dim)"
    assert b1.shape == (1, H) and b2.shape == (1, O)

    out_dtype = jnp.bfloat16 if bf16_out else jnp.float32
    out_bytes = 2 if bf16_out else 4

    # One-time casts of the tiny, VMEM-resident weights/biases.
    w1c = w1.astype(jnp.bfloat16)
    w2c = w2.astype(jnp.bfloat16)
    b1c = b1.astype(jnp.float32)
    b2c = b2.astype(jnp.float32)

    # Advisory cost for XLA's scheduler: tiny flops, bytes-dominated.
    flops = 2 * B * S * H + 2 * B * H * O
    bytes_accessed = (B * S * 4 + B * O * out_bytes
                      + (S * H + H * O) * 2 + (H + O) * 4)
    cost = pl.CostEstimate(flops=flops, transcendentals=0,
                           bytes_accessed=bytes_accessed)

    # VMEM estimate for a single-shot call: x (f32) + h (f32) + out + weights.
    single_shot_bytes = (B * S * 4) + (B * H * 4) + (B * O * out_bytes) \
        + (S * H + H * O) * 2 + (H + O) * 4

    if B <= block_b and single_shot_bytes < _VMEM_BUDGET_BYTES:
        # Single tile: no grid, no pipeline machinery, no batch handling at
        # all — every operand is simply VMEM-resident.
        vmem = pl.BlockSpec(memory_space=pltpu.MemorySpace.VMEM)
        out = pl.pallas_call(
            dqn_kernel,
            out_shape=jax.ShapeDtypeStruct((B, O), out_dtype),
            in_specs=[vmem] * 5,
            out_specs=vmem,
            cost_estimate=cost,
        )(x, w1c, b1c, w2c, b2c)
    else:
        # Stream batch tiles; weights/biases pinned in VMEM across all tiles.
        # No wrapper-side batch padding: ragged last block via pl.cdiv grid.
        Bt = min(block_b, B, 4096)
        Bt = max(8, (Bt // 8) * 8)          # sublane-aligned batch tile
        n_tiles = pl.cdiv(B, Bt)
        out = pl.pallas_call(
            dqn_kernel,
            out_shape=jax.ShapeDtypeStruct((B, O), out_dtype),
            grid=(n_tiles,),
            in_specs=[
                pl.BlockSpec((Bt, S), lambda i: (i, 0)),    # x: streams (f32)
                pl.BlockSpec((S, H), lambda i: (0, 0)),     # w1: resident
                pl.BlockSpec((1, H), lambda i: (0, 0)),     # b1: resident
                pl.BlockSpec((H, O), lambda i: (0, 0)),     # w2: resident
                pl.BlockSpec((1, O), lambda i: (0, 0)),     # b2: resident
            ],
            out_specs=pl.BlockSpec((Bt, O), lambda i: (i, 0)),
            compiler_params=pltpu.CompilerParams(
                # TODO(synk): on v7x verify both TensorCores are busy in xprof;
                # if only one TC runs the grid, switch to pltpu.CORE_PARALLEL.
                dimension_semantics=("parallel",)),
            cost_estimate=cost,
        )(x, w1c, b1c, w2c, b2c)

    # The module's final view(-1, A, D) — free metadata reshape.
    return out.reshape(-1, action_space_dim, action_dim)


def init_params(key, state_dim, action_space_dim, action_dim):
    """Deterministic PyTorch-style Linear init (uniform(-1/sqrt(fan_in), ...))."""
    hidden = state_dim * 10
    out = action_space_dim * action_dim
    k1, k2, k3, k4 = jax.random.split(key, 4)
    bound1 = 1.0 / jnp.sqrt(state_dim)
    bound2 = 1.0 / jnp.sqrt(hidden)
    w1 = jax.random.uniform(k1, (state_dim, hidden), jnp.float32, -bound1, bound1)
    b1 = jax.random.uniform(k2, (1, hidden), jnp.float32, -bound1, bound1)
    w2 = jax.random.uniform(k3, (hidden, out), jnp.float32, -bound2, bound2)
    b2 = jax.random.uniform(k4, (1, out), jnp.float32, -bound2, bound2)
    return w1, b1, w2, b2


def reference_forward(x, w1, b1, w2, b2, action_space_dim, action_dim):
    # Same bf16-operand / f32-accumulate recipe as the kernel.
    # (Note: bf16 MXU operands deviate from PyTorch's f32 nn.Linear; the 1e-2
    #  tolerance covers it.)
    h = jnp.dot(x.astype(jnp.bfloat16), w1.astype(jnp.bfloat16),
                preferred_element_type=jnp.float32) + b1
    h = jnp.maximum(h, 0.0)
    o = jnp.dot(h.astype(jnp.bfloat16), w2.astype(jnp.bfloat16),
                preferred_element_type=jnp.float32) + b2
    return o.reshape(-1, action_space_dim, action_dim)


if __name__ == "__main__":
    # Small shapes consistent with the module: state_dim=16 -> hidden=160,
    # action_space_dim=4, action_dim=8 -> 32 outputs per sample.
    state_dim = 16
    action_space_dim = 4
    action_dim = 8

    key = jax.random.PRNGKey(0)
    kp, k1, k2, k3 = jax.random.split(key, 4)
    w1, b1, w2, b2 = init_params(kp, state_dim, action_space_dim, action_dim)

    # Path 1: single-shot (no grid, everything VMEM-resident), batch=8.
    x = jax.random.normal(k1, (8, state_dim), jnp.float32)
    out = jax.block_until_ready(
        dqn_forward(x, w1, b1, w2, b2, action_space_dim, action_dim))
    ref = reference_forward(x, w1, b1, w2, b2, action_space_dim, action_dim)
    assert out.shape == (8, action_space_dim, action_dim)
    assert jnp.allclose(out, ref, atol=1e-2, rtol=1e-2)

    # Path 2: batch-streamed 'parallel' grid (4 tiles of 8), unpadded (Bt, 32)
    # output tiles, resident weights.
    x2 = jax.random.normal(k2, (32, state_dim), jnp.float32)
    out2 = jax.block_until_ready(
        dqn_forward(x2, w1, b1, w2, b2, action_space_dim, action_dim,
                    block_b=8))
    ref2 = reference_forward(x2, w1, b1, w2, b2, action_space_dim, action_dim)
    assert out2.shape == (32, action_space_dim, action_dim)
    assert jnp.allclose(out2, ref2, atol=1e-2, rtol=1e-2)

    # Path 3: ragged batch (B=20, Bt=8 -> cdiv grid of 3, partial last block)
    # with no wrapper-side batch padding.
    x3 = jax.random.normal(k3, (20, state_dim), jnp.float32)
    out3 = jax.block_until_ready(
        dqn_forward(x3, w1, b1, w2, b2, action_space_dim, action_dim,
                    block_b=8))
    ref3 = reference_forward(x3, w1, b1, w2, b2, action_space_dim, action_dim)
    assert out3.shape == (20, action_space_dim, action_dim)
    assert jnp.allclose(out3, ref3, atol=1e-2, rtol=1e-2)

    print("KERNEL_OK")
</pallas_src>

<mosaic_0001>
module attributes {stable_mosaic.version = 11 : i64} {
  func.func @dqn_kernel(%arg0: memref<8x16xf32, #tpu.memory_space<vmem>>, %arg1: memref<16x160xbf16, #tpu.memory_space<vmem>>, %arg2: memref<1x160xf32, #tpu.memory_space<vmem>>, %arg3: memref<160x32xbf16, #tpu.memory_space<vmem>>, %arg4: memref<1x32xf32, #tpu.memory_space<vmem>>, %arg5: memref<8x32xf32, #tpu.memory_space<vmem>>) attributes {dimension_semantics = [], scalar_prefetch = 0 : i64, scratch_operands = 0 : i64, tpu.core_type = #tpu.core_type<tc>} {
    %c0 = arith.constant 0 : index
    %c0_0 = arith.constant 0 : index
    %0 = vector.load %arg0[%c0, %c0_0] : memref<8x16xf32, #tpu.memory_space<vmem>>, vector<8x16xf32>
    %1 = arith.truncf %0 : vector<8x16xf32> to vector<8x16xbf16>
    %c0_1 = arith.constant 0 : index
    %c0_2 = arith.constant 0 : index
    %2 = vector.load %arg1[%c0_1, %c0_2] : memref<16x160xbf16, #tpu.memory_space<vmem>>, vector<16x160xbf16>
    %cst = arith.constant dense<0.000000e+00> : vector<8x160xf32>
    %3 = tpu.matmul %1, %2, %cst {dimension_numbers = #tpu.dot_dimension_numbers<[1], [0], [0], [1], [0, 0, 1, 1], [], []>} : vector<8x16xbf16>, vector<16x160xbf16>, vector<8x160xf32> -> vector<8x160xf32>
    %c0_3 = arith.constant 0 : index
    %c0_4 = arith.constant 0 : index
    %4 = vector.load %arg2[%c0_3, %c0_4] : memref<1x160xf32, #tpu.memory_space<vmem>>, vector<1x160xf32>
    %5 = vector.broadcast %4 : vector<1x160xf32> to vector<8x160xf32>
    %6 = arith.addf %3, %5 : vector<8x160xf32>
    %cst_5 = arith.constant 0.000000e+00 : f32
    %7 = vector.broadcast %cst_5 : f32 to vector<8x160xf32>
    %8 = arith.maximumf %6, %7 : vector<8x160xf32>
    %9 = arith.truncf %8 : vector<8x160xf32> to vector<8x160xbf16>
    %c0_6 = arith.constant 0 : index
    %c0_7 = arith.constant 0 : index
    %10 = vector.load %arg3[%c0_6, %c0_7] : memref<160x32xbf16, #tpu.memory_space<vmem>>, vector<160x32xbf16>
    %cst_8 = arith.constant dense<0.000000e+00> : vector<8x32xf32>
    %11 = tpu.matmul %9, %10, %cst_8 {dimension_numbers = #tpu.dot_dimension_numbers<[1], [0], [0], [1], [0, 0, 1, 1], [], []>} : vector<8x160xbf16>, vector<160x32xbf16>, vector<8x32xf32> -> vector<8x32xf32>
    %c0_9 = arith.constant 0 : index
    %c0_10 = arith.constant 0 : index
    %12 = vector.load %arg4[%c0_9, %c0_10] : memref<1x32xf32, #tpu.memory_space<vmem>>, vector<1x32xf32>
    %13 = vector.broadcast %12 : vector<1x32xf32> to vector<8x32xf32>
    %14 = arith.addf %11, %13 : vector<8x32xf32>
    %c0_11 = arith.constant 0 : index
    %c0_12 = arith.constant 0 : index
    %15 = vector.load %arg5[%c0_11, %c0_12] : memref<8x32xf32, #tpu.memory_space<vmem>>, vector<8x32xf32>
    tpu.vector_store %arg5[%c0_11, %c0_12], %14 {strides = array<i32>} : memref<8x32xf32, #tpu.memory_space<vmem>>, vector<8x32xf32>,
    return
  }
}

</mosaic_0001>

<bundles_post_ra>
// kernel: dqn_forward.1
= control target key start
LH: loop header
LB: loop body
LE: loop exit
PB: predicated region body
PF: predicated region fallthrough
CT: control target
= control target key end

     0   :  { %v261_v1 = vmov 0   ;;  %vm47_vm0 = vcmask 130048   ;;  %v27_v15 = vlaneseq  ;;  %vm183_vm1 = vcmask 261120   ;;  %s340_s1 = inlined_call_operand.vmem [shape: bf16[16,160], index: 1, kind: input, shape index: {}]   ;;  %s341_s0 = inlined_call_operand.vmem [shape: f32[8,16], index: 0, kind: input, shape index: {}]   ;;  %s342_s3 = inlined_call_operand.vmem [shape: bf16[160,32], index: 3, kind: input, shape index: {}]   ;;  %s343_s2 = inlined_call_operand.vmem [shape: f32[1,160], index: 2, kind: input, shape index: {}]   ;;  %s344_s4 = inlined_call_operand.vmem [shape: f32[1,32], index: 4, kind: input, shape index: {}]   ;;  %s345_s5 = inlined_call_operand.vmem [shape: f32[8,32], index: 5, kind: output, shape index: {}]  }
   0x1   :  { %v248_v0 = vld [vmem:[%s340_s1 + $0x4] ss:$8 sps:$4 sm:$0xff]   ;;  %83 = vmatprep.mubr.bf16.mxu0 %v261_v1  ;;  %187 = vmatprep.subr.bf16.mxu1 %v261_v1  ;;  %v250_v2 = vld [vmem:[%s340_s1] ss:$8 sps:$4 sm:$0xff]   ;;  %v253_v7 = vld [vmem:[%s342_s3 + $0x10] sm:$0xff]  }
   0x2   :  { %v21_v3 = vld [vmem:[%s341_s0] sm:$0xff]  ;;  %51 = vmatprep.subr.bf16.mxu0 %v248_v0  ;;  %v252_v6 = vld [vmem:[%s342_s3 + $0x8] sm:$0xff]   ;;  %v254_v8 = vld [vmem:[%s342_s3 + $0x18] sm:$0xff]   ;;  %v28_v16 = vshrl.u32 %v27_v15, 7 }
   0x3   :  { %v22_v4 = vpack.c.bf16 %v21_v3, %v21_v3  ;;  %v251_v5 = vld [vmem:[%s342_s3] sm:$0xff]   ;;  %52 = vmatpush1.bf16.msra.mxu0 %v250_v2  ;;  %v256_v10 = vld [vmem:[%s342_s3 + $0x28] sm:$0xff]   ;;  %v257_v11 = vld [vmem:[%s342_s3 + $0x30] sm:$0xff]  }
   0x4   :  { %188 = vmatpush1.bf16.msra.mxu1 %v251_v5  ;;  %v255_v9 = vld [vmem:[%s342_s3 + $0x20] sm:$0xff]   ;;  %v258_v12 = vld [vmem:[%s342_s3 + $0x38] sm:$0xff]   ;;  %v260_v14 = vld [vmem:[%s342_s3 + $0x48] sm:$0xff]   ;;  %v29_v17 = vsub.s32 0, %v28_v16  ;;  %v33_v19 = vsub.s32 1, %v28_v16 }
   0x5   :  { %189 = vmatprep.subr.bf16.mxu1 %v261_v1  ;;  %v259_v13 = vld [vmem:[%s342_s3 + $0x40] sm:$0xff]  }
   0x6   :  { %234 = vmatmul.mubr.msk.bf16.vlgmr.msra.gmra.mrb[0].mxu0 %vm47_vm0, %v22_v4  ;;  %v25_v18 = vld [vmem:[%s343_s2] sm:$0x3] }
   0x7   :  { %v30_v20 = vrot.slane %v25_v18, %v29_v17  ;;  %v34_v21 = vrot.slane %v25_v18, %v33_v19  ;;  %v235_v32 = vld [vmem:[%s344_s4] ss:$0 sm:$0xff] }
   0x8   :  { %190 = vmatpush1.bf16.msra.mxu1 %v252_v6 }
   0x9   :  { %191 = vmatprep.subr.bf16.mxu1 %v261_v1 }
   0xc   :  { %192 = vmatpush1.bf16.msra.mxu1 %v253_v7 }
   0xd   :  { %193 = vmatprep.subr.bf16.mxu1 %v261_v1 }
  0x10   :  { %194 = vmatpush1.bf16.msra.mxu1 %v254_v8 }
  0x11   :  { %195 = vmatprep.subr.bf16.mxu1 %v261_v1 }
  0x14   :  { %196 = vmatpush1.bf16.msra.mxu1 %v255_v9 }
  0x15   :  { %197 = vmatprep.subr.bf16.mxu1 %v261_v1 }
  0x18   :  { %198 = vmatpush1.bf16.msra.mxu1 %v256_v10 }
  0x19   :  { %199 = vmatprep.subr.bf16.mxu1 %v261_v1 }
  0x1c   :  { %200 = vmatpush1.bf16.msra.mxu1 %v257_v11 }
  0x1d   :  { %201 = vmatprep.subr.bf16.mxu1 %v261_v1 }
  0x20   :  { %202 = vmatpush1.bf16.msra.mxu1 %v258_v12 }
  0x21   :  { %203 = vmatprep.subr.bf16.mxu1 %v261_v1 }
  0x24   :  { %204 = vmatpush1.bf16.msra.mxu1 %v259_v13 }
  0x25   :  { %205 = vmatprep.subr.bf16.mxu1 %v261_v1 }
  0x28   :  { %206 = vmatpush1.bf16.msra.mxu1 %v260_v14 }
  0xd9   :  { %v85_v22 = vpop.f32.mrb[0].mxu0 }
  0xda   :  { %v86_v23 = vadd.f32 %v85_v22, %v30_v20  ;;  %v87_v24 = vpop.f32.mrb[1].mxu0 }
  0xdb   :  { %v88_v25 = vadd.f32 %v87_v24, %v34_v21  ;;  %v89_v26 = vpop.f32.mrb[2].mxu0 }
  0xdc   :  { %v92_v27 = vmax.f32 %v86_v23, 0.0  ;;  %v90_v28 = vpop.f32.mrb[3].mxu0 }
  0xdd   :  { %v93_v29 = vmax.f32 %v88_v25, 0.0 }
  0xde   :  { %v94_v31 = vpack.c.bf16 %v92_v27, %v92_v27 }
  0xdf   :  { %v95_v30 = vpack.c.bf16 %v93_v29, %v93_v29 }
  0xe1   :  { %246 = vmatprep.mubr.msk.bf16.mxu1 %vm183_vm1, %v95_v30 }
  0xe2   :  { %220 = vmatmul.mubr.bf16.vlgmr.msra.gmra.mrb[0].mxu1 %v94_v31 }
 0x1b5   :  { %v221_v33 = vpop.f32.mrb[0].mxu1 }
 0x1b6   :  { %v222_v34 = vadd.f32 %v235_v32, %v221_v33  ;;  %v223_v35 = vpop.f32.mrb[1].mxu1 }
 0x1b7   :  { %v224_v36 = vpop.f32.mrb[2].mxu1 }
 0x1b8   :  { %227 = vst.msk [vmem:[%s345_s5] sm:$0xff] %vm183_vm1, %v222_v34  ;;  %v225_v37 = vpop.f32.mrb[3].mxu1 }

</bundles_post_ra>
